<compile_context>
chip_gen: v6e
topology: v6e:2x2x1
jax: 0.10.0
libtpu: 0.0.40
codegen_flags: <defaults>
</compile_context>

<pallas_src>
import math

import jax
import jax.numpy as jnp
from jax.experimental import pallas as pl
from jax.experimental.pallas import tpu as pltpu


# ----------------------------------------------------------------------------
# Pallas kernel: per-(batch, spatial-tile) modulated 1x1 conv == channel matmul.
# ----------------------------------------------------------------------------
def _torgb_kernel(cbias_ref, w_ref, x_ref, o_ref):
    # cbias_ref : SMEM (3,)    -- ToRGB bias scalars
    # w_ref     : (1, 3, C)    -- per-sample effective conv weight (scale folded)
    # x_ref     : (1, C, THW)  -- spatial tile of the input features
    # o_ref     : (1, 3, THW)
    acc = jnp.dot(w_ref[0], x_ref[0], preferred_element_type=jnp.float32)  # (3, THW)
    row = jax.lax.broadcasted_iota(jnp.int32, acc.shape, 0)
    bias = jnp.where(row == 0, cbias_ref[0],
                     jnp.where(row == 1, cbias_ref[1], cbias_ref[2]))
    o_ref[0] = (acc + bias).astype(o_ref.dtype)


# ----------------------------------------------------------------------------
# Parameter-side / per-sample modulation math -- plain JAX glue (tiny tensors).
# ----------------------------------------------------------------------------
def prepare_effective_params(params, style):
    """Returns w_eff (B, 3, C) with conv_scale and style modulation folded in,
    plus the (3,) ToRGB bias."""
    C, S = params["mod_weight"].shape
    lr_mul = 1.0

    # LeFTWeightModulatorFC applied to the style->channel EqualLinear weight/bias.
    w_mul = params["fc_w_mul_out"] @ params["fc_w_mul_in"].T              # (C, S)
    w_add = params["fc_w_add_out"] @ params["fc_w_add_in"].T              # (C, S)
    w_mod_hat = params["mod_weight"] * w_mul + w_add                      # (C, S)
    b_mod_hat = params["mod_bias"] * params["fc_b_mul"] + params["fc_b_add"]
    mod_scale = 1.0 / math.sqrt(S) * lr_mul
    s = style @ (w_mod_hat * mod_scale).T + (b_mod_hat * lr_mul)          # (B, C)

    # LeFTWeightModulatorConv applied to the 1x1 conv weight (1, 3, C, 1, 1).
    mul1 = jnp.matmul(params["conv_w_mul1_out"],
                      params["conv_w_mul1_inst"])                          # (R, 3, 1)
    add1 = params["conv_w_add1_out"] @ params["conv_w_add1_inst"].T        # (3, 1)
    mul1 = jax.nn.relu(mul1 + add1[None, :, :])                            # (R, 3, 1)
    mul2 = jnp.matmul(params["conv_w_mul2_in"],
                      jnp.swapaxes(mul1, 0, 1))                            # (3, C, 1)
    w_hat = params["conv_weight"] * mul2.reshape(3, C, 1, 1)               # (1,3,C,1,1)
    add2 = params["conv_w_add2_in"] @ params["conv_w_add2_inst"].T         # (C, 1)
    w_hat = w_hat + add2.reshape(1, 1, C, 1, 1)
    what = w_hat.reshape(3, C)

    conv_scale = 1.0 / math.sqrt(C * 1 * 1)                                # fan_in, k=1
    # Fold conv_scale + per-sample style modulation into one effective weight.
    w_eff = what[None, :, :] * (conv_scale * s)[:, None, :]                # (B, 3, C)
    cbias = params["rgb_bias"].reshape(3)
    return w_eff, cbias


def _pick_thw(hw, c, itemsize, x_budget_bytes):
    """Largest lane-aligned (multiple-of-128) spatial tile whose double-buffered
    x slab fits the given VMEM budget (keeps the kernel portable to v7x)."""
    if hw <= 128:
        return int(hw)
    max_thw = max(128, x_budget_bytes // (2 * c * itemsize))
    thw = (max_thw // 128) * 128
    return int(min(thw, hw))


def lifelong_torgb_forward(x, style, params, *,
                           compute_dtype=jnp.float32,
                           x_vmem_budget_bytes=16 * 1024 * 1024):
    """LifelongToRGB.forward (skip=None): modulated 1x1 conv (demodulate=False)
    followed by the ToRGB bias add."""
    B, C, H, W = x.shape
    HW = H * W

    w_eff, cbias = prepare_effective_params(params, style)        # (B,3,C), (3,)

    # Optional bf16 streaming (halves HBM traffic); accumulation stays f32.
    x_flat = x.reshape(B, C, HW).astype(compute_dtype)
    w_eff = w_eff.astype(compute_dtype)
    itemsize = jnp.dtype(compute_dtype).itemsize

    thw = _pick_thw(HW, C, itemsize, x_vmem_budget_bytes)
    n_hw = pl.cdiv(HW, thw)

    # Explicit VMEM budget: double-buffered x / w_eff / out blocks plus slack.
    # Stays well under v7x's 64 MiB physical VMEM.
    block_bytes = 2 * (C * thw + 3 * C) * itemsize + 2 * 3 * thw * 4
    vmem_limit = int(min(48 * 1024 * 1024,
                         max(8 * 1024 * 1024, 2 * block_bytes)))

    out_flat = pl.pallas_call(
        _torgb_kernel,
        out_shape=jax.ShapeDtypeStruct((B, 3, HW), jnp.float32),
        grid_spec=pltpu.PrefetchScalarGridSpec(
            num_scalar_prefetch=0,
            grid=(B, n_hw),
            in_specs=[
                # 3 bias scalars live in SMEM (no padded VMEM tile, no DMA buffer).
                pl.BlockSpec(memory_space=pltpu.MemorySpace.SMEM),
                # Per-sample effective weight: invariant across the HW axis.
                pl.BlockSpec((1, 3, C), lambda b, h: (b, 0, 0)),
                # Spatially tiled feature map (lane axis = HW).
                pl.BlockSpec((1, C, thw), lambda b, h: (b, 0, h)),
            ],
            out_specs=pl.BlockSpec((1, 3, thw), lambda b, h: (b, 0, h)),
        ),
        compiler_params=pltpu.CompilerParams(
            dimension_semantics=("parallel", "parallel"),
            vmem_limit_bytes=vmem_limit),
    )(cbias, w_eff, x_flat)

    return out_flat.reshape(B, 3, H, W)


# ----------------------------------------------------------------------------
# Deterministic parameter init matching the PyTorch module __init__.
# ----------------------------------------------------------------------------
def init_params(key, C, S, R):
    k_conv, k_mod = jax.random.split(key)
    inv23 = 1.0 / math.pow(R, 2.0 / 3.0)
    return dict(
        # LifelongModulatedConv2d.weight : (1, out=3, in=C, k=1, k=1)
        conv_weight=jax.random.normal(k_conv, (1, 3, C, 1, 1), jnp.float32),
        # LifelongEqualLinear(style_dim -> C): weight (C, S), bias init = 1
        mod_weight=jax.random.normal(k_mod, (C, S), jnp.float32),
        mod_bias=jnp.full((C,), 1.0, jnp.float32),
        # LifelongToRGB.bias : (1, 3, 1, 1)
        rgb_bias=jnp.zeros((1, 3, 1, 1), jnp.float32),
        # LeFTWeightModulatorFC (rank R, bias=True, left_use_add=True)
        fc_w_mul_in=jnp.ones((S, R), jnp.float32) / math.sqrt(R),
        fc_w_mul_out=jnp.ones((C, R), jnp.float32) / math.sqrt(R),
        fc_w_add_in=jnp.zeros((S, R), jnp.float32),
        fc_w_add_out=jnp.zeros((C, R), jnp.float32),
        fc_b_mul=jnp.ones((C,), jnp.float32),
        fc_b_add=jnp.zeros((C,), jnp.float32),
        # LeFTWeightModulatorConv (rank R, kernel_size=1, left_use_act/add=True)
        conv_w_mul1_out=jnp.ones((3, R), jnp.float32) * inv23,
        conv_w_mul1_inst=jnp.ones((R, R, 1), jnp.float32) * inv23,
        conv_w_add1_out=jnp.zeros((3, R), jnp.float32),
        conv_w_add1_inst=jnp.zeros((1, R), jnp.float32),
        conv_w_mul2_in=jnp.ones((C, R), jnp.float32) * inv23,
        conv_w_add2_in=jnp.zeros((C, R), jnp.float32),
        conv_w_add2_inst=jnp.zeros((1, R), jnp.float32),
    )


if __name__ == "__main__":
    B, C, H, W = 2, 32, 16, 16
    S, R = 32, 4

    key = jax.random.PRNGKey(0)
    kx, ks, kp = jax.random.split(key, 3)
    x = jax.random.normal(kx, (B, C, H, W), jnp.float32)
    style = jax.random.normal(ks, (B, S), jnp.float32)
    params = init_params(kp, C, S, R)

    out = lifelong_torgb_forward(x, style, params)
    out = jax.block_until_ready(out)

    # Pure-JAX reference of the same forward (fused ModulatedConv2d path,
    # demodulate=False, kernel_size=1, skip=None).
    w_eff_ref, _ = prepare_effective_params(params, style)           # (B, 3, C)
    ref = jnp.einsum("boc,bchw->bohw", w_eff_ref, x) + params["rgb_bias"]

    assert out.shape == (B, 3, H, W)
    err = float(jnp.max(jnp.abs(out - ref)))
    assert err < 1e-4, f"max abs err {err}"
    print("KERNEL_OK")
</pallas_src>

<mosaic_0001>
module attributes {stable_mosaic.version = 11 : i64} {
  func.func @_torgb_kernel(%arg0: i32, %arg1: i32, %arg2: memref<3xf32, #tpu.memory_space<smem>>, %arg3: memref<1x3x32xf32, #tpu.memory_space<vmem>>, %arg4: memref<1x32x256xf32, #tpu.memory_space<vmem>>, %arg5: memref<1x3x256xf32, #tpu.memory_space<vmem>>) attributes {dimension_semantics = [#tpu.dimension_semantics<parallel>, #tpu.dimension_semantics<parallel>], iteration_bounds = array<i64: 2, 1>, scalar_prefetch = 0 : i64, scratch_operands = 0 : i64, tpu.core_type = #tpu.core_type<tc>, window_params = [{transform_indices = @transform_0, window_bounds = array<i64: 3>}, {transform_indices = @transform_1, window_bounds = array<i64: 1, 3, 32>}, {transform_indices = @transform_2, window_bounds = array<i64: 1, 32, 256>}, {transform_indices = @transform_3, window_bounds = array<i64: 1, 3, 256>}]} {
    %c0 = arith.constant 0 : index
    %c0_0 = arith.constant 0 : index
    %c0_1 = arith.constant 0 : index
    %0 = vector.load %arg3[%c0, %c0_0, %c0_1] : memref<1x3x32xf32, #tpu.memory_space<vmem>>, vector<1x3x32xf32>
    %1 = vector.shape_cast %0 : vector<1x3x32xf32> to vector<3x32xf32>
    %c0_2 = arith.constant 0 : index
    %c0_3 = arith.constant 0 : index
    %c0_4 = arith.constant 0 : index
    %2 = vector.load %arg4[%c0_2, %c0_3, %c0_4] : memref<1x32x256xf32, #tpu.memory_space<vmem>>, vector<1x32x256xf32>
    %3 = vector.shape_cast %2 : vector<1x32x256xf32> to vector<32x256xf32>
    %cst = arith.constant dense<0.000000e+00> : vector<3x256xf32>
    %4 = tpu.matmul %1, %3, %cst {dimension_numbers = #tpu.dot_dimension_numbers<[1], [0], [0], [1], [0, 0, 1, 1], [], []>} : vector<3x32xf32>, vector<32x256xf32>, vector<3x256xf32> -> vector<3x256xf32>
    %5 = tpu.iota {dimensions = array<i32: 0>} : vector<3x256xi32>
    %c0_i32 = arith.constant 0 : i32
    %6 = vector.broadcast %c0_i32 : i32 to vector<3x256xi32>
    %7 = arith.cmpi eq, %5, %6 : vector<3x256xi32>
    %c0_5 = arith.constant 0 : index
    %8 = memref.load %arg2[%c0_5] : memref<3xf32, #tpu.memory_space<smem>>
    %c1_i32 = arith.constant 1 : i32
    %9 = vector.broadcast %c1_i32 : i32 to vector<3x256xi32>
    %10 = arith.cmpi eq, %5, %9 : vector<3x256xi32>
    %c1 = arith.constant 1 : index
    %11 = memref.load %arg2[%c1] : memref<3xf32, #tpu.memory_space<smem>>
    %c2 = arith.constant 2 : index
    %12 = memref.load %arg2[%c2] : memref<3xf32, #tpu.memory_space<smem>>
    %13 = vector.broadcast %11 : f32 to vector<3x256xf32>
    %14 = vector.broadcast %12 : f32 to vector<3x256xf32>
    %15 = arith.select %10, %13, %14 : vector<3x256xi1>, vector<3x256xf32>
    %16 = vector.broadcast %8 : f32 to vector<3x256xf32>
    %17 = arith.select %7, %16, %15 : vector<3x256xi1>, vector<3x256xf32>
    %18 = arith.addf %4, %17 : vector<3x256xf32>
    %c0_6 = arith.constant 0 : index
    %c0_7 = arith.constant 0 : index
    %c0_8 = arith.constant 0 : index
    %19 = vector.load %arg5[%c0_6, %c0_7, %c0_8] : memref<1x3x256xf32, #tpu.memory_space<vmem>>, vector<1x3x256xf32>
    %20 = vector.shape_cast %19 : vector<1x3x256xf32> to vector<3x256xf32>
    %21 = vector.shape_cast %18 : vector<3x256xf32> to vector<1x3x256xf32>
    tpu.vector_store %arg5[%c0_6, %c0_7, %c0_8], %21 {strides = array<i32>} : memref<1x3x256xf32, #tpu.memory_space<vmem>>, vector<1x3x256xf32>,
    return
  }
  func.func @transform_0(%arg0: i32, %arg1: i32) -> i32 {
    %c0_i32 = arith.constant 0 : i32
    %c0_i32_0 = arith.constant 0 : i32
    return %c0_i32 : i32
  }
  func.func @transform_1(%arg0: i32, %arg1: i32) -> (i32, i32, i32) {
    %c0_i32 = arith.constant 0 : i32
    %c0_i32_0 = arith.constant 0 : i32
    %c0_i32_1 = arith.constant 0 : i32
    return %arg0, %c0_i32, %c0_i32_0 : i32, i32, i32
  }
  func.func @transform_2(%arg0: i32, %arg1: i32) -> (i32, i32, i32) {
    %c0_i32 = arith.constant 0 : i32
    %c0_i32_0 = arith.constant 0 : i32
    return %arg0, %c0_i32, %arg1 : i32, i32, i32
  }
  func.func @transform_3(%arg0: i32, %arg1: i32) -> (i32, i32, i32) {
    %c0_i32 = arith.constant 0 : i32
    %c0_i32_0 = arith.constant 0 : i32
    return %arg0, %c0_i32, %arg1 : i32, i32, i32
  }
}

</mosaic_0001>

<bundles_post_ra>
// kernel: tpu_custom_call.1
= control target key start
LH: loop header
LB: loop body
LE: loop exit
PB: predicated region body
PF: predicated region fallthrough
CT: control target
= control target key end

     0   :  { %8 = vsyncpa [#allocation4], 0  ;;  %s812_s0 = inlined_call_operand.vmem [shape: f32[3], index: 0, kind: input, shape index: {}]   ;;  %s813_s1 = inlined_call_operand.vmem [shape: f32[2,3,32], index: 1, kind: input, shape index: {}]   ;;  %s814_s2 = inlined_call_operand.hbm [shape: f32[2,32,256], index: 2, kind: input, shape index: {}]   ;;  %s815_s3 = inlined_call_operand.vmem [shape: f32[2,3,256], index: 3, kind: output, shape index: {}]  }
   0x1   :  { %9 = vsyncpa [#allocation3], 0 }
   0x2   :  { %11 = vsyncpa [#allocation3 + $0x1], 0  ;;  %s684_s12 = smov 0   ;;  %s686_s13 = smov 0  }
   0x3   :  { %s688_s14 = smov 0   ;;  %s690_s15 = smov 0  }
   0x4   :  { %s692_s16 = smov 0   ;;  %s694_s17 = smov 0  }
   0x5 LB: > { %s470_s18 = sadd.s32 4294967295, %s657_s17   ;;  %s85_s19 = sadd.s32 1, %s645_s14  ;;  %s657_s17 = sphi %s694_s17, %s17_s17   ;;  %s653_s16 = sphi %s692_s16, %s829_s16   ;;  %s649_s15 = sphi %s690_s15, %s828_s15   ;;  %s645_s14 = sphi %s688_s14, %s827_s14   ;;  %s641_s13 = sphi %s686_s13, %s826_s13   ;;  %s637_s12 = sphi %s684_s12, %s825_s12  }
   0x6   : > { %p92_p0 = scmp.ne.s32.totalorder %s645_s14, %s641_s13  ;;  %p93_p1 = scmp.eq.s32.totalorder %s657_s17, 0 }
   0x7   : > { %p98_p2 = scmp.ne.s32.totalorder %s641_s13, %s637_s12  ;;  %p718_p3 = scmp.eq.s32.totalorder %s470_s18, 0 }
   0x8   : > { %p94_p4 = por %p93_p1, %p92_p0  ;;  %p472_p5 = scmp.ge.s32.totalorder %s657_s17, 1 }
   0x9   : > { %p725_p6 = por %p718_p3, %p98_p2  ;;  %p137_p7 = scmp.lt.s32.totalorder %s657_s17, 3 }
   0xa   : > { %s150_s24 = sshll.u32 %s812_s0, 4  ;;  %p506_p10 = scmp.lt.s32.totalorder %s657_s17, 2  ;;  %s151_s24 = int_to_ptr.vmem [resolvable:$true] %s150_s24 }
   0xb   : > { %s819_s21 = scalar_select %p725_p6, 1, 0 }
   0xc   : > { %p733_p8 = pnand %p472_p5, %p137_p7  ;;  %s168_s26 = sand.u32 1, %s645_s14  }
   0xd   : > { %p743_p12 = pnand %p506_p10, %p94_p4  ;;  %s560_s28 = scalar_lea.vmem %s151_s24, 16 }
   0xe   : > { %s820_s25 = scalar_select %p733_p8, 1, 0 }
   0xf   : > { %p497_p9 = pneg %p733_p8  ;;  %p561_p13 = scmp.ne.s32.totalorder %s151_s24, %s560_s28 }
  0x10   : > { %p568_p5 = scmp.lt.s32.totalorder %s151_s24, %s151_s24  ;;  %p569_p7 = scmp.lt.s32.totalorder %s560_s28, %s560_s28 }
  0x11   : > { %p498_p11 = pnand %p497_p9, %p718_p3 }
  0x12   : > { %p570_p6 = por %p569_p7, %p568_p5 }
  0x13   : > { %p562_p0 = pneg %p498_p11 }
  0x15   : > { %p563_p1 = pnand %p562_p0, %p561_p13 }
  0x17   : > { %p564_p2 = pneg %p563_p1 }
  0x19   : > { %p571_p8 = pnand %p570_p6, %p564_p2 }
  0x1b   : > { %574 = shalt.err (!%p571_p8)
}
  0x1c   : > { %s659_s29 = smov [#allocation2]   ;;  %s29_s30 = sadd.s32 1, %s653_s16 }
  0x1d   : > { %500 = dma.vmem_to_smem (!%p498_p11), %s151_s24, 16, %s659_s29, [#allocation4]  }
  0x1e   : > { %s475_s4 = sshll.u32 %s168_s26, 6  ;;  %p31_p4 = scmp.ge.s32.totalorder %s29_s30, 2 }
  0x1f   : > { %s489_s5 = sshll.u32 %s653_s16, 10  ;;  %s172_s6 = scalar_lea.vmem [#allocation5], %s475_s4 }
  0x20   : > { %s181_s7 = sshll.u32 %s172_s6, 4  ;;  %s831_s30 = smov (%p31_p4, %s29_s30), 0  ;;  %s182_s7 = int_to_ptr.vmem [resolvable:$true] %s181_s7 }
  0x21   : > { %s180_s10 = scalar_lea.hbm %s814_s2, %s489_s5  ;;  %s80_s11 = ssub.s32 %s653_s16, %s831_s30 }
  0x22   : > { %p756_p6 = scmp.eq.s32.totalorder %s80_s11, 0  ;;  %s169_s18 = scalar_lea.sflag [#allocation3], %s168_s26 }
  0x23   : > { %p577_p8 = pneg %p743_p12  ;;  %s588_s22 = scalar_lea.vmem %s182_s7, 1024 }
  0x24   : > { %p589_p9 = scmp.ne.s32.totalorder %s182_s7, %s588_s22  ;;  %s660_s23 = smov [#allocation5]  }
  0x25   : > { %s593_s24 = sshll.u32 %s660_s23, 4  ;;  %s594_s24 = int_to_ptr.vmem [resolvable:$false] %s593_s24 }
  0x26   : > { %p591_p10 = pnand %p589_p9, %p577_p8  ;;  %s595_s28 = scalar_lea.vmem %s594_s24, 2048 }
  0x27   : > { %p596_p13 = scmp.lt.s32.totalorder %s182_s7, %s594_s24  ;;  %p597_p0 = scmp.lt.s32.totalorder %s595_s28, %s588_s22 }
  0x28   : > { %p592_p11 = pneg %p591_p10 }
  0x29   : > { %p598_p1 = por %p597_p0, %p596_p13 }
  0x2b   : > { %p599_p2 = pnand %p598_p1, %p592_p11 }
  0x2d   : > { %602 = shalt.err (!%p599_p2)
}
  0x2e   : > { %s661_s29 = smov 256   ;;  %s662_s26 = smov 16  }
  0x2f   : > { %504 = dma.hbm_to_vmem [thread:$0]  (!%p743_p12), %s180_s10, 1024, %s182_s7, %s169_s18, %s661_s29, %s661_s29, %s662_s26  }
  0x30   : > { %s769_s4 = scalar_select %p756_p6, %s645_s14, %s85_s19  }
  0x31   : > { %p823_p5 = scmp.ne.s32.totalorder %s820_s25, 0 }
  0x33   : > { %193 = sbr.rel (%p823_p5) target bundleno = 272 (0x110), region = 32 }
  0x38   : > { %628 = dma.done.wait (%p718_p3), [#allocation4], 16  }
  0x39   : > { %630 = vsyncadd (%p718_p3), [#allocation4], 4294967280  ;;  %s199_s5 = sand.u32 1, %s641_s13   ;;  %p824_p12 = scmp.ne.s32.totalorder %s819_s21, 0 }
  0x3a   : > { %s480_s6 = sshll.u32 %s199_s5, 6  ;;  %s200_s8 = scalar_lea.sflag [#allocation3], %s199_s5 }
  0x3b   : > { %s203_s27 = scalar_lea.vmem [#allocation5], %s480_s6 }
  0x3c   : > { %632 = dma.done.wait (%p824_p12), %s200_s8, 1024  }
  0x3d   : > { %634 = vsyncadd (%p824_p12), %s200_s8, 4294966272 }
  0x3e   : > { %208 = sfence }
  0x3f   : > { %v258_v0 = vld [vmem:[%s203_s27 + $0x38] sm:$0xff]  ;;  %v257_v1 = vld [vmem:[%s203_s27 + $0x30] sm:$0xff]  ;;  %v256_v2 = vld [vmem:[%s203_s27 + $0x28] sm:$0xff]  ;;  %p235_p7 = scmp.lt.s32.totalorder %s649_s15, 1  ;;  %v663_v4 = vmov 0.0   ;;  %vm271_vm0 = vcmask 261120   ;;  %v259_v10 = vlaneseq }
  0x40   : > { %299 = vmatprep.subr.mxu0 %v258_v0  ;;  %v255_v3 = vld [vmem:[%s203_s27 + $0x20] sm:$0xff]  ;;  %339 = vmatprep.mubr.f32.mxu0 %v663_v4  ;;  %v254_v5 = vld [vmem:[%s203_s27 + $0x18] sm:$0xff]  ;;  %v253_v6 = vld [vmem:[%s203_s27 + $0x10] sm:$0xff]  ;;  %s484_s7 = sld [smem:[#allocation2 + $0x1]] }
  0x41   : > { %300 = vmatpush1.msra.mxu0 %v257_v1  ;;  %s833_s15 = smov (!%p235_p7, %s649_s15), 1  ;;  %v252_v7 = vld [vmem:[%s203_s27 + $0x8] sm:$0xff]  ;;  %v251_v8 = vld [vmem:[%s203_s27] sm:$0xff]  ;;  %s485_s9 = sld [smem:[#allocation2 + $0x2]]  ;;  %v260_v11 = vshrl.u32 %v259_v10, 7 }
  0x42   : > { %301 = vmatprep.subr.mxu0 %v256_v2  ;;  %s481_s19 = sshll.u32 %s833_s15, 2  ;;  %s262_s10 = sld [smem:[#allocation2]] }
  0x43   : > { %302 = vmatpush1.msra.mxu0 %v255_v3  ;;  %s238_s25 = scalar_lea.vmem %s813_s1, %s481_s19  ;;  %vm263_vm1 = vcmp.eq.s32.totalorder %v260_v11, 1  ;;  %vm261_vm2 = vcmp.eq.s32.totalorder %v260_v11, 0  ;;  %s490_s11 = sshll.u32 %s833_s15, 3 }
  0x44   : > { %303 = vmatprep.subr.mxu0 %v254_v5  ;;  %v250_v9 = vld [vmem:[%s238_s25] sm:$0x7]  ;;  %s248_s22 = scalar_lea.vmem %s815_s3, %s490_s11 }
  0x45   : > { %304 = vmatpush1.msra.mxu0 %v253_v6 }
  0x46   : > { %305 = vmatprep.subr.mxu0 %v252_v7  ;;  %v266_v12 = vstv %s484_s7 }
  0x47   : > { %306 = vmatpush1.msra.mxu0 %v251_v8  ;;  %v267_v13 = vstv %s485_s9 }
  0x48   : > { %486 = vmatmul.mubr.msk.f32.vlgmr.msra.gmra.mxu0 %vm271_vm0, %v250_v9  ;;  %v268_v14 = vsel %vm263_vm1, %v266_v12, %v267_v13  ;;  %v269_v15 = vstv %s262_s10 }
  0x49   : > { %v270_v16 = vsel %vm261_vm2, %v269_v15, %v268_v14 }
 0x108   : > { %v341_v17 = vpop.f32.mrf.mxu0 }
 0x109   : > { %v342_v19 = vadd.f32 %v341_v17, %v270_v16 }
 0x10a   : > { %v343_v18 = vpop.f32.mrf.mxu0 }
 0x10b   : > { %v344_v20 = vadd.f32 %v343_v18, %v270_v16 }
 0x10d   : > { %v348_v21 = vcombine.low %v342_v19, %v344_v20 }
 0x10f   : > { %350 = vst [vmem:[%s248_s22] sm:$0x77] %v348_v21 }
 0x110 PF: > { %s17_s17 = sadd.s32 1, %s657_s17   ;;  %s825_s12 = smov %s641_s13 }
 0x111   : > { %p14_p3 = scmp.ge.s32.totalorder %s17_s17, 4   ;;  %s826_s13 = smov %s645_s14 }
 0x112   : > { %s827_s14 = smov %s769_s4  ;;  %s828_s15 = smov %s653_s16 }
 0x113   : > { %s829_s16 = smov %s831_s30  ;;  %16 = sbr.rel (!%p14_p3) target bundleno = 5 (0x5), region = 80 }
 0x118   :  { %381 = vsyncpa [#allocation3], 1 }
 0x119   :  { %383 = vsyncpa [#allocation3 + $0x1], 1 }
 0x11a   :  { %384 = vsyncpa [#allocation4], 1 }
 0x11b   :  { %386 = vsyncpa [#allocation4 + $0x1], 1 }

</bundles_post_ra>
